<compile_context>
chip_gen: v6e
topology: v6e:2x2x1
jax: 0.10.0
libtpu: 0.0.40
codegen_flags: <defaults>
</compile_context>

<pallas_src>
import functools

import jax
import jax.numpy as jnp
from jax import lax
from jax.experimental import pallas as pl
from jax.experimental.pallas import tpu as pltpu


def _round_up(a, b):
    return (a + b - 1) // b * b


def _vmem_limit_bytes():
    # Generation-aware scoped-VMEM limit: physical capacity minus headroom
    # (~108 MiB on v5e/v6e, ~44 MiB on v7x) instead of a hard-coded constant.
    try:
        cap = getattr(pltpu.get_tpu_info(), "vmem_capacity_bytes", None)
        if cap:
            return int(max(cap - 20 * 1024 * 1024, 32 * 1024 * 1024))
    except Exception:
        pass
    return 48 * 1024 * 1024


# ---------------------------------------------------------------------------
# Kernel A: masked scatter_sum over `col` (cnt folded into the same matmul),
# normalization, node-slab write and the fused edge-MLP projection.
# Grid: (node_chunks ["parallel"], edge_tiles ["arbitrary" reduction]).
# acc_ref is a resident [NCH, EA_P] VMEM accumulator (init/finalize via when).
# ---------------------------------------------------------------------------
def _scatter_project_kernel(col_ref, ea_ref, x_ref, w_ref,
                            node_ref, hrow_ref, hcol_ref,
                            acc_ref, *, input_dim, out_p, gather_dtype):
    j = pl.program_id(1)                                   # edge-tile (reduction)

    @pl.when(j == 0)
    def _init():
        acc_ref[...] = jnp.zeros_like(acc_ref)

    col = col_ref[...]                                     # [1, TE] i32 (-1 padding)
    vals = ea_ref[...]                                     # [TE, EA_P] = [ea*m | m | 0]
    nch = acc_ref.shape[0]
    te = col.shape[1]
    offset = pl.program_id(0) * nch

    # One-hot built already transposed -> plain A@B on the MXU (no XLU transpose).
    iota = lax.broadcasted_iota(jnp.int32, (nch, te), 0) + offset
    gct = (iota == col).astype(gather_dtype)               # [NCH, TE]
    acc_ref[...] += jnp.dot(gct, vals.astype(gather_dtype),
                            preferred_element_type=jnp.float32)

    @pl.when(j == pl.num_programs(1) - 1)
    def _finalize():
        acc = acc_ref[...]                                 # [NCH, EA_P]
        agg = acc[:, :input_dim]
        cnt = acc[:, input_dim:input_dim + 1]
        nr = agg / (cnt + 1.0)                             # exact division (once)
        x = x_ref[...]                                     # [NCH, nd]

        slab = jnp.concatenate([nr, x], axis=-1)           # [NCH, in+nd]
        pad_w = node_ref.shape[1] - slab.shape[1]
        if pad_w:
            slab_out = jnp.concatenate(
                [slab, jnp.zeros((slab.shape[0], pad_w), jnp.float32)], axis=-1)
        else:
            slab_out = slab
        node_ref[...] = slab_out

        # Single fused MXU matmul for both hoisted projections (row & col).
        h = jnp.dot(slab, w_ref[...], preferred_element_type=jnp.float32)
        hrow_ref[...] = h[:, :out_p]
        hcol_ref[...] = h[:, out_p:]


# ---------------------------------------------------------------------------
# Kernel B: per-edge gather of the projected node features, accumulated over
# node chunks on top of the precomputed (ea @ We + bias) base.
# Grid: (edge_tiles ["parallel"], node_chunks ["arbitrary" reduction]).
# ---------------------------------------------------------------------------
def _gather_add_kernel(row_ref, col_ref, base_ref, hrow_ref, hcol_ref,
                       out_ref, *, gather_dtype):
    c = pl.program_id(1)                                   # node-chunk (reduction)

    @pl.when(c == 0)
    def _init():
        out_ref[...] = base_ref[...]                       # ea @ We + bias (hoisted)

    row = row_ref[...]                                     # [TE, 1] i32 (-1 padding)
    col = col_ref[...]                                     # [TE, 1] i32
    te = row.shape[0]
    nch = hrow_ref.shape[0]
    offset = c * nch

    iota = lax.broadcasted_iota(jnp.int32, (te, nch), 1) + offset
    gr = (iota == row).astype(gather_dtype)                # [TE, NCH]
    gc = (iota == col).astype(gather_dtype)
    hr = hrow_ref[...].astype(gather_dtype)                # [NCH, OUT_P]
    hc = hcol_ref[...].astype(gather_dtype)

    out_ref[...] += (jnp.dot(gr, hr, preferred_element_type=jnp.float32)
                     + jnp.dot(gc, hc, preferred_element_type=jnp.float32))


def pathcon_forward(x, num_nodes, edge_index, edge_attr, mask, weight, bias,
                    *, input_dim, node_dim, edge_tile=512, node_chunk=512,
                    bf16_gather=False):
    f32 = jnp.float32
    E = edge_attr.shape[0]
    N = int(num_nodes)
    out_dim = weight.shape[0]
    gather_dtype = jnp.bfloat16 if bf16_gather else f32

    OUT_P = max(128, _round_up(out_dim, 128))              # lane-dense MLP width
    NODE_P = max(128, _round_up(input_dim + node_dim, 128))
    EA_P = max(128, _round_up(input_dim + 1, 128))         # [ea | cnt] padded to lanes

    # --- edge tiling (multiple of 8; multiple of 128 if more than one tile) --
    E_min = _round_up(max(E, 8), 8)
    te = E_min if E_min <= edge_tile else _round_up(edge_tile, 128)
    E_pad = _round_up(E, te)
    n_tiles = E_pad // te
    pe = E_pad - E

    # --- node tiling ---------------------------------------------------------
    N_min = _round_up(max(N, 8), 8)
    nch = min(_round_up(node_chunk, 8), N_min)
    N_pad = _round_up(max(N, nch), nch)
    n_chunks = N_pad // nch

    # --- inputs / padding (padding index -1 never matches any node iota) -----
    row = edge_index[0].astype(jnp.int32)
    col = edge_index[1].astype(jnp.int32)
    m = mask.astype(f32)
    ea = edge_attr.astype(f32)
    xf = x.astype(f32)
    if pe:
        row = jnp.concatenate([row, jnp.full((pe,), -1, jnp.int32)])
        col = jnp.concatenate([col, jnp.full((pe,), -1, jnp.int32)])
    col_t = col.reshape(1, E_pad)                           # transposed for kernel A
    row2d = row.reshape(E_pad, 1)
    col2d = col.reshape(E_pad, 1)

    # Pre-masked, cnt-augmented, lane-padded edge features for the scatter.
    ea_m = jnp.concatenate([ea * m[:, None], m[:, None]], axis=-1)   # [E, in+1]
    ea_m = jnp.pad(ea_m, ((0, pe), (0, EA_P - (input_dim + 1))))

    x_pad = jnp.pad(xf, ((0, N_pad - N), (0, 0)))

    # --- weight splitting; fused projection weight; hoisted edge base --------
    wt = weight.T.astype(f32)                               # [3*in + 2*nd, out]
    d = input_dim + node_dim

    def pad_out(w):
        return jnp.pad(w, ((0, 0), (0, OUT_P - out_dim)))

    w_row = wt[:d]                                          # [nr[row] | x[row]]
    w_col = wt[d:2 * d]                                     # [nr[col] | x[col]]
    w_cat = jnp.concatenate([pad_out(w_row), pad_out(w_col)], axis=1)  # [d, 2*OUT_P]
    we = wt[2 * d:]                                         # edge_attr weights [in, out]

    # ea @ We + bias as one efficient XLA matmul (bias folded), fed per tile.
    edge_base = jnp.pad(ea @ we + bias.astype(f32)[None, :],
                        ((0, pe), (0, OUT_P - out_dim)))    # [E_pad, OUT_P]

    vmem_limit = _vmem_limit_bytes()

    # --- Kernel A: scatter + normalize + fused projection --------------------
    kernel_a = functools.partial(_scatter_project_kernel, input_dim=input_dim,
                                 out_p=OUT_P, gather_dtype=gather_dtype)
    node_slab, h_row, h_col = pl.pallas_call(
        kernel_a,
        out_shape=(jax.ShapeDtypeStruct((N_pad, NODE_P), f32),
                   jax.ShapeDtypeStruct((N_pad, OUT_P), f32),
                   jax.ShapeDtypeStruct((N_pad, OUT_P), f32)),
        grid=(n_chunks, n_tiles),
        in_specs=[pl.BlockSpec((1, te), lambda n, j: (0, j)),           # col (transposed)
                  pl.BlockSpec((te, EA_P), lambda n, j: (j, 0)),        # [ea*m | m | 0]
                  pl.BlockSpec((nch, node_dim), lambda n, j: (n, 0)),   # x chunk
                  pl.BlockSpec((d, 2 * OUT_P), lambda n, j: (0, 0))],   # fused W
        out_specs=(pl.BlockSpec((nch, NODE_P), lambda n, j: (n, 0)),
                   pl.BlockSpec((nch, OUT_P), lambda n, j: (n, 0)),
                   pl.BlockSpec((nch, OUT_P), lambda n, j: (n, 0))),
        scratch_shapes=[pltpu.VMEM((nch, EA_P), f32)],
        compiler_params=pltpu.CompilerParams(
            dimension_semantics=("parallel", "arbitrary"),
            vmem_limit_bytes=vmem_limit),
    )(col_t, ea_m, x_pad, w_cat)

    # --- Kernel B: per-edge gather over node chunks + hoisted base -----------
    kernel_b = functools.partial(_gather_add_kernel, gather_dtype=gather_dtype)
    edge_slab = pl.pallas_call(
        kernel_b,
        out_shape=jax.ShapeDtypeStruct((E_pad, OUT_P), f32),
        grid=(n_tiles, n_chunks),
        in_specs=[pl.BlockSpec((te, 1), lambda i, c: (i, 0)),           # row
                  pl.BlockSpec((te, 1), lambda i, c: (i, 0)),           # col
                  pl.BlockSpec((te, OUT_P), lambda i, c: (i, 0)),       # ea@We + bias
                  pl.BlockSpec((nch, OUT_P), lambda i, c: (c, 0)),      # h_row chunk
                  pl.BlockSpec((nch, OUT_P), lambda i, c: (c, 0))],     # h_col chunk
        out_specs=pl.BlockSpec((te, OUT_P), lambda i, c: (i, 0)),
        compiler_params=pltpu.CompilerParams(
            dimension_semantics=("parallel", "arbitrary"),
            vmem_limit_bytes=vmem_limit),
    )(row2d, col2d, edge_base, h_row, h_col)

    node_rep = node_slab[:N, :input_dim + node_dim]
    edge_rep = edge_slab[:E, :out_dim]
    return node_rep, edge_rep


def ref_forward(x, num_nodes, edge_index, edge_attr, mask, weight, bias):
    # Pure-JAX reference mirroring the PyTorch module.
    row = edge_index[0]
    col = edge_index[1]
    masked = edge_attr * mask[:, None]
    node_rep = jax.ops.segment_sum(masked, col, num_segments=num_nodes)
    cnt = jax.ops.segment_sum(mask[:, None], col, num_segments=num_nodes)
    node_rep = node_rep / (cnt + 1.0)
    node_rep = jnp.concatenate([node_rep, x], 1)
    edge_rep = jnp.concatenate([node_rep[row], node_rep[col], edge_attr], -1)
    edge_rep = edge_rep @ weight.T + bias
    return node_rep, edge_rep


if __name__ == "__main__":
    input_dim = 8     # edge_attr feature dim
    node_dim = 6      # PathCon default
    output_dim = 16
    num_nodes = 16
    num_edges = 32

    key = jax.random.PRNGKey(0)
    k1, k2, k3, k4, k5, k6 = jax.random.split(key, 6)

    x = jax.random.normal(k1, (num_nodes, node_dim), dtype=jnp.float32)
    edge_attr = jax.random.normal(k2, (num_edges, input_dim), dtype=jnp.float32)
    edge_index = jax.random.randint(k3, (2, num_edges), 0, num_nodes, dtype=jnp.int32)
    mask = (jax.random.uniform(k4, (num_edges,)) > 0.3).astype(jnp.float32)

    in_features = input_dim * 3 + node_dim * 2
    xav = (6.0 / (in_features + output_dim)) ** 0.5
    weight = jax.random.uniform(k5, (output_dim, in_features),
                                minval=-xav, maxval=xav, dtype=jnp.float32)
    bbound = 1.0 / (in_features ** 0.5)
    bias = jax.random.uniform(k6, (output_dim,),
                              minval=-bbound, maxval=bbound, dtype=jnp.float32)

    fwd = functools.partial(pathcon_forward, input_dim=input_dim, node_dim=node_dim)
    node_rep, edge_rep = fwd(x, num_nodes, edge_index, edge_attr, mask, weight, bias)
    node_rep = jax.block_until_ready(node_rep)
    edge_rep = jax.block_until_ready(edge_rep)

    node_ref, edge_ref = ref_forward(x, num_nodes, edge_index, edge_attr, mask,
                                     weight, bias)

    assert node_rep.shape == (num_nodes, input_dim + node_dim)
    assert edge_rep.shape == (num_edges, output_dim)
    assert jnp.allclose(node_rep, node_ref, atol=1e-4, rtol=1e-4)
    assert jnp.allclose(edge_rep, edge_ref, atol=1e-4, rtol=1e-4)

    print("KERNEL_OK")
</pallas_src>

<mosaic_0001>
module attributes {stable_mosaic.version = 11 : i64} {
  func.func @_scatter_project_kernel(%arg0: i32, %arg1: i32, %arg2: memref<1x32xi32, #tpu.memory_space<vmem>>, %arg3: memref<32x128xf32, #tpu.memory_space<vmem>>, %arg4: memref<16x6xf32, #tpu.memory_space<vmem>>, %arg5: memref<14x256xf32, #tpu.memory_space<vmem>>, %arg6: memref<16x128xf32, #tpu.memory_space<vmem>>, %arg7: memref<16x128xf32, #tpu.memory_space<vmem>>, %arg8: memref<16x128xf32, #tpu.memory_space<vmem>>, %arg9: memref<16x128xf32, #tpu.memory_space<vmem>>) attributes {dimension_semantics = [#tpu.dimension_semantics<parallel>, #tpu.dimension_semantics<arbitrary>], iteration_bounds = array<i64: 1, 1>, scalar_prefetch = 0 : i64, scratch_operands = 1 : i64, tpu.core_type = #tpu.core_type<tc>, window_params = [{transform_indices = @transform_0, window_bounds = array<i64: 1, 32>}, {transform_indices = @transform_1, window_bounds = array<i64: 32, 128>}, {transform_indices = @transform_2, window_bounds = array<i64: 16, 6>}, {pipeline_mode = #tpu.pipeline_mode<synchronous>, transform_indices = @transform_3, window_bounds = array<i64: 14, 256>}, {transform_indices = @transform_4, window_bounds = array<i64: 16, 128>}, {transform_indices = @transform_5, window_bounds = array<i64: 16, 128>}, {transform_indices = @transform_6, window_bounds = array<i64: 16, 128>}]} {
    %c0_i32 = arith.constant 0 : i32
    %0 = arith.cmpi eq, %arg1, %c0_i32 : i32
    %1 = arith.extui %0 : i1 to i32
    %c0_i32_0 = arith.constant 0 : i32
    %2 = arith.cmpi ne, %1, %c0_i32_0 : i32
    scf.if %2 {
      %cst_10 = arith.constant 0.000000e+00 : f32
      %20 = vector.broadcast %cst_10 : f32 to vector<16x128xf32>
      %c0_11 = arith.constant 0 : index
      %c0_12 = arith.constant 0 : index
      %21 = vector.load %arg9[%c0_11, %c0_12] : memref<16x128xf32, #tpu.memory_space<vmem>>, vector<16x128xf32>
      tpu.vector_store %arg9[%c0_11, %c0_12], %20 {strides = array<i32>} : memref<16x128xf32, #tpu.memory_space<vmem>>, vector<16x128xf32>,
    } else {
    }
    %c0 = arith.constant 0 : index
    %c0_1 = arith.constant 0 : index
    %3 = vector.load %arg2[%c0, %c0_1] : memref<1x32xi32, #tpu.memory_space<vmem>>, vector<1x32xi32>
    %c0_2 = arith.constant 0 : index
    %c0_3 = arith.constant 0 : index
    %4 = vector.load %arg3[%c0_2, %c0_3] : memref<32x128xf32, #tpu.memory_space<vmem>>, vector<32x128xf32>
    %c16_i32 = arith.constant 16 : i32
    %5 = arith.muli %arg0, %c16_i32 : i32
    %6 = tpu.iota {dimensions = array<i32: 0>} : vector<16x32xi32>
    %7 = vector.broadcast %5 : i32 to vector<16x32xi32>
    %8 = arith.addi %6, %7 : vector<16x32xi32>
    %9 = vector.broadcast %3 : vector<1x32xi32> to vector<16x32xi32>
    %10 = arith.cmpi eq, %8, %9 : vector<16x32xi32>
    %11 = arith.extui %10 : vector<16x32xi1> to vector<16x32xi32>
    %12 = arith.sitofp %11 : vector<16x32xi32> to vector<16x32xf32>
    %c0_4 = arith.constant 0 : index
    %c0_5 = arith.constant 0 : index
    %13 = vector.load %arg9[%c0_4, %c0_5] : memref<16x128xf32, #tpu.memory_space<vmem>>, vector<16x128xf32>
    %cst = arith.constant dense<0.000000e+00> : vector<16x128xf32>
    %14 = tpu.matmul %12, %4, %cst {dimension_numbers = #tpu.dot_dimension_numbers<[1], [0], [0], [1], [0, 0, 1, 1], [], []>} : vector<16x32xf32>, vector<32x128xf32>, vector<16x128xf32> -> vector<16x128xf32>
    %15 = arith.addf %13, %14 : vector<16x128xf32>
    %c0_6 = arith.constant 0 : index
    %c0_7 = arith.constant 0 : index
    %16 = vector.load %arg9[%c0_6, %c0_7] : memref<16x128xf32, #tpu.memory_space<vmem>>, vector<16x128xf32>
    tpu.vector_store %arg9[%c0_6, %c0_7], %15 {strides = array<i32>} : memref<16x128xf32, #tpu.memory_space<vmem>>, vector<16x128xf32>,
    %c0_i32_8 = arith.constant 0 : i32
    %17 = arith.cmpi eq, %arg1, %c0_i32_8 : i32
    %18 = arith.extui %17 : i1 to i32
    %c0_i32_9 = arith.constant 0 : i32
    %19 = arith.cmpi ne, %18, %c0_i32_9 : i32
    scf.if %19 {
      %c0_10 = arith.constant 0 : index
      %c0_11 = arith.constant 0 : index
      %20 = vector.load %arg9[%c0_10, %c0_11] : memref<16x128xf32, #tpu.memory_space<vmem>>, vector<16x128xf32>
      %21 = vector.extract_strided_slice %20 {offsets = [0, 0], sizes = [16, 8], strides = [1, 1]} : vector<16x128xf32> to vector<16x8xf32>
      %22 = vector.extract_strided_slice %20 {offsets = [0, 8], sizes = [16, 1], strides = [1, 1]} : vector<16x128xf32> to vector<16x1xf32>
      %cst_12 = arith.constant 1.000000e+00 : f32
      %23 = vector.broadcast %cst_12 : f32 to vector<16x1xf32>
      %24 = arith.addf %22, %23 : vector<16x1xf32>
      %25 = vector.broadcast %24 : vector<16x1xf32> to vector<16x8xf32>
      %26 = arith.divf %21, %25 : vector<16x8xf32>
      %c0_13 = arith.constant 0 : index
      %c0_14 = arith.constant 0 : index
      %27 = vector.load %arg4[%c0_13, %c0_14] : memref<16x6xf32, #tpu.memory_space<vmem>>, vector<16x6xf32>
      %28 = tpu.concatenate %26, %27 in 1 : vector<16x8xf32>, vector<16x6xf32> -> vector<16x14xf32>
      %cst_15 = arith.constant 0.000000e+00 : f32
      %29 = vector.broadcast %cst_15 : f32 to vector<16x114xf32>
      %30 = tpu.concatenate %28, %29 in 1 : vector<16x14xf32>, vector<16x114xf32> -> vector<16x128xf32>
      %c0_16 = arith.constant 0 : index
      %c0_17 = arith.constant 0 : index
      %31 = vector.load %arg6[%c0_16, %c0_17] : memref<16x128xf32, #tpu.memory_space<vmem>>, vector<16x128xf32>
      tpu.vector_store %arg6[%c0_16, %c0_17], %30 {strides = array<i32>} : memref<16x128xf32, #tpu.memory_space<vmem>>, vector<16x128xf32>,
      %c0_18 = arith.constant 0 : index
      %c0_19 = arith.constant 0 : index
      %32 = vector.load %arg5[%c0_18, %c0_19] : memref<14x256xf32, #tpu.memory_space<vmem>>, vector<14x256xf32>
      %cst_20 = arith.constant dense<0.000000e+00> : vector<16x256xf32>
      %33 = tpu.matmul %28, %32, %cst_20 {dimension_numbers = #tpu.dot_dimension_numbers<[1], [0], [0], [1], [0, 0, 1, 1], [], []>} : vector<16x14xf32>, vector<14x256xf32>, vector<16x256xf32> -> vector<16x256xf32>
      %34 = vector.extract_strided_slice %33 {offsets = [0, 0], sizes = [16, 128], strides = [1, 1]} : vector<16x256xf32> to vector<16x128xf32>
      %c0_21 = arith.constant 0 : index
      %c0_22 = arith.constant 0 : index
      %35 = vector.load %arg7[%c0_21, %c0_22] : memref<16x128xf32, #tpu.memory_space<vmem>>, vector<16x128xf32>
      tpu.vector_store %arg7[%c0_21, %c0_22], %34 {strides = array<i32>} : memref<16x128xf32, #tpu.memory_space<vmem>>, vector<16x128xf32>,
      %36 = vector.extract_strided_slice %33 {offsets = [0, 128], sizes = [16, 128], strides = [1, 1]} : vector<16x256xf32> to vector<16x128xf32>
      %c0_23 = arith.constant 0 : index
      %c0_24 = arith.constant 0 : index
      %37 = vector.load %arg8[%c0_23, %c0_24] : memref<16x128xf32, #tpu.memory_space<vmem>>, vector<16x128xf32>
      tpu.vector_store %arg8[%c0_23, %c0_24], %36 {strides = array<i32>} : memref<16x128xf32, #tpu.memory_space<vmem>>, vector<16x128xf32>,
    } else {
    }
    return
  }
  func.func @transform_0(%arg0: i32, %arg1: i32) -> (i32, i32) {
    %c0_i32 = arith.constant 0 : i32
    %c0_i32_0 = arith.constant 0 : i32
    return %c0_i32, %arg1 : i32, i32
  }
  func.func @transform_1(%arg0: i32, %arg1: i32) -> (i32, i32) {
    %c0_i32 = arith.constant 0 : i32
    %c0_i32_0 = arith.constant 0 : i32
    return %arg1, %c0_i32 : i32, i32
  }
  func.func @transform_2(%arg0: i32, %arg1: i32) -> (i32, i32) {
    %c0_i32 = arith.constant 0 : i32
    %c0_i32_0 = arith.constant 0 : i32
    return %arg0, %c0_i32 : i32, i32
  }
  func.func @transform_3(%arg0: i32, %arg1: i32) -> (i32, i32) {
    %c0_i32 = arith.constant 0 : i32
    %c0_i32_0 = arith.constant 0 : i32
    %c0_i32_1 = arith.constant 0 : i32
    return %c0_i32, %c0_i32_0 : i32, i32
  }
  func.func @transform_4(%arg0: i32, %arg1: i32) -> (i32, i32) {
    %c0_i32 = arith.constant 0 : i32
    %c0_i32_0 = arith.constant 0 : i32
    return %arg0, %c0_i32 : i32, i32
  }
  func.func @transform_5(%arg0: i32, %arg1: i32) -> (i32, i32) {
    %c0_i32 = arith.constant 0 : i32
    %c0_i32_0 = arith.constant 0 : i32
    return %arg0, %c0_i32 : i32, i32
  }
  func.func @transform_6(%arg0: i32, %arg1: i32) -> (i32, i32) {
    %c0_i32 = arith.constant 0 : i32
    %c0_i32_0 = arith.constant 0 : i32
    return %arg0, %c0_i32 : i32, i32
  }
}

</mosaic_0001>

<bundles_post_ra>
// kernel: tpu_custom_call.1
= control target key start
LH: loop header
LB: loop body
LE: loop exit
PB: predicated region body
PF: predicated region fallthrough
CT: control target
= control target key end

     0   :  { %12 = vsyncpa [#allocation4], 0  ;;  %s586_s0 = inlined_call_operand.vmem [shape: s32[1,32], index: 0, kind: input, shape index: {}]   ;;  %s587_s1 = inlined_call_operand.hbm [shape: f32[32,128], index: 1, kind: input, shape index: {}]   ;;  %s588_s2 = inlined_call_operand.vmem [shape: f32[16,6], index: 2, kind: input, shape index: {}]   ;;  %s589_s3 = inlined_call_operand.hbm [shape: f32[14,256], index: 3, kind: input, shape index: {}]   ;;  %s590_s4 = inlined_call_operand.hbm [shape: f32[16,128], index: 4, kind: output, shape index: {0}]   ;;  %s591_s5 = inlined_call_operand.hbm [shape: f32[16,128], index: 5, kind: output, shape index: {1}]   ;;  %s592_s6 = inlined_call_operand.hbm [shape: f32[16,128], index: 6, kind: output, shape index: {2}]  }
   0x1   :  { %13 = vsyncpa [#allocation7], 0 }
   0x2   :  { %14 = vsyncpa [#allocation5], 0 }
   0x3   :  { %15 = vsyncpa [#allocation10], 0  ;;  %s502_s21 = smov [#allocation3]  }
   0x4   :  { %s23_s22 = sshll.u32 %s502_s21, 4  ;;  %s24_s22 = int_to_ptr.vmem [resolvable:$true] %s23_s22 }
   0x5   :  { %s402_s23 = scalar_lea.vmem %s24_s22, 512  ;;  %p407_p1 = scmp.lt.s32.totalorder %s24_s22, %s24_s22 }
   0x6   :  { %p403_p0 = scmp.ne.s32.totalorder %s24_s22, %s402_s23  ;;  %p408_p2 = scmp.lt.s32.totalorder %s402_s23, %s402_s23 }
   0x8   :  { %p409_p3 = por %p408_p2, %p407_p1 }
   0xa   :  { %p410_p4 = pnand %p409_p3, %p403_p0 }
   0xc   :  { %413 = shalt.err (!%p410_p4)
}
   0xd   :  { %s503_s24 = smov 128   ;;  %s504_s25 = smov 8  }
   0xe   :  { %29 = dma.hbm_to_vmem [thread:$0]  %s587_s1, 512, %s24_s22, [#allocation4], %s503_s24, %s503_s24, %s504_s25  }
   0xf   :  { %s505_s28 = smov [#allocation6]  }
  0x10   :  { %s37_s29 = sshll.u32 %s505_s28, 4  ;;  %s38_s29 = int_to_ptr.vmem [resolvable:$true] %s37_s29 }
  0x11   :  { %s422_s30 = scalar_lea.vmem %s38_s29, 512  ;;  %p427_p6 = scmp.lt.s32.totalorder %s38_s29, %s38_s29 }
  0x12   :  { %p423_p5 = scmp.ne.s32.totalorder %s38_s29, %s422_s30  ;;  %p428_p7 = scmp.lt.s32.totalorder %s422_s30, %s422_s30 }
  0x14   :  { %p429_p8 = por %p428_p7, %p427_p6 }
  0x16   :  { %p430_p9 = pnand %p429_p8, %p423_p5 }
  0x18   :  { %433 = shalt.err (!%p430_p9)
}
  0x19   :  { %s506_s7 = smov 256   ;;  %s507_s8 = smov 16  }
  0x1a   :  { %43 = dma.hbm_to_vmem [thread:$0]  %s589_s3, 512, %s38_s29, [#allocation7], %s506_s7, %s506_s7, %s507_s8  }
  0x1b   :  { %494 = dma.done.wait [#allocation4], 512  }
  0x1c   :  { %495 = vsyncadd [#allocation4], 4294966784 }
  0x1d   :  { %496 = dma.done.wait [#allocation7], 512  }
  0x1e   :  { %497 = vsyncadd [#allocation7], 4294966784  ;;  %v62_v0 = vlaneseq  ;;  %v508_v1 = vmov 0.0   ;;  %v60_v4 = vld [vmem:[#allocation3 + $0x18] sm:$0xff]  ;;  %v59_v5 = vld [vmem:[#allocation3 + $0x10] sm:$0xff]  ;;  %vm80_vm0 = vcmask 261120  }
  0x1f   :  { %286 = vmatprep.mubr.f32.mxu1 %v508_v1  ;;  %367 = vmatprep.subr.mxu0 %v60_v4  ;;  %v352_v6 = vld [vmem:[%s586_s0] ss:$0 sm:$0xff]  ;;  %v58_v7 = vld [vmem:[#allocation3 + $0x8] sm:$0xff]  ;;  %v509_v11 = vmov 8   ;;  %v208_v17 = vld [vmem:[#allocation6 + $0x18] sm:$0x3f] }
  0x20   :  { %v63_v2 = vshrl.u32 %v62_v0, 7  ;;  %368 = vmatpush3.msra.mxu0 %v60_v4  ;;  %v57_v9 = vld [vmem:[#allocation3] sm:$0xff]  ;;  %389 = vset.pattern.permute.xlu0 %v509_v11  ;;  %v188_v13 = vld [vmem:[%s588_s2 + $0x8] sm:$0xff]  ;;  %vm215_vm3 = vcmask 1045504   ;;  %v207_v18 = vld [vmem:[#allocation6 + $0x10] sm:$0x3f] }
  0x21   :  { %369 = vmatprep.subr.mxu0 %v59_v5  ;;  %v187_v12 = vld [vmem:[%s588_s2] sm:$0xff]  ;;  %v206_v19 = vld [vmem:[#allocation6 + $0x8] sm:$0xff]  ;;  %357 = vmatprep.subr.msk.mxu1 %vm215_vm3, %v208_v17  ;;  %vm197_vm4 = vcmask 64512   ;;  %vm200_vm5 = vcmask 113664   ;;  %s510_s2 = smov [#allocation8]  }
  0x22   :  { %v64_v3 = vadd.s32 8, %v63_v2  ;;  %vm72_vm1 = vcmp.eq.s32.totalorder %v63_v2, %v352_v6  ;;  %370 = vmatpush3.msra.mxu0 %v59_v5  ;;  %191 = vrot.lane.b32.xlu1 %v187_v12, %s504_s25  ;;  %v205_v21 = vld [vmem:[#allocation6] sm:$0xff]  ;;  %s308_s14 = sshll.u32 %s510_s2, 4  ;;  %s309_s14 = int_to_ptr.vmem [resolvable:$true] %s308_s14 }
  0x23   :  { %v353_v8 = vsel %vm72_vm1, 1.0, %v508_v1  ;;  %371 = vmatprep.subr.mxu0 %v58_v7  ;;  %358 = vmatpush1.msk.msra.mxu1 %vm215_vm3, %v207_v18  ;;  %s434_s15 = scalar_lea.vmem %s309_s14, 256  ;;  %p439_p11 = scmp.lt.s32.totalorder %s309_s14, %s309_s14 }
  0x24   :  { %vm73_vm2 = vcmp.eq.s32.totalorder %v64_v3, %v352_v6  ;;  %375 = vmatprep.mubr.msk.f32.mxu0 %vm80_vm0, %v353_v8  ;;  %372 = vmatpush3.msra.mxu0 %v58_v7  ;;  %p435_p10 = scmp.ne.s32.totalorder %s309_s14, %s434_s15  ;;  %p440_p12 = scmp.lt.s32.totalorder %s434_s15, %s434_s15 }
  0x25   :  { %v354_v10 = vsel %vm73_vm2, 1.0, %v508_v1  ;;  %373 = vmatprep.subr.mxu0 %v57_v9  ;;  %252 = vmatprep.subr.mxu1 %v206_v19 }
  0x26   :  { %374 = vmatpush3.msra.mxu0 %v57_v9  ;;  %193 = vrot.lane.b32.xlu1 %v188_v13, %s504_s25  ;;  %p441_p13 = por %p440_p12, %p439_p11 }
  0x27   :  { %376 = vmatmul.mubr.msk.f32.vlgmr.msra.gmra.mxu0 %vm80_vm0, %v354_v10  ;;  %253 = vmatpush1.msra.mxu1 %v205_v21 }
  0x28   :  { %p442_p0 = pnand %p441_p13, %p435_p10 }
  0x94   :  { %v192_v24 = vpop.permute.xlu1 %191 }
  0x98   :  { %v194_v30 = vpop.permute.xlu1 %193 }
  0xe7   :  { %v377_v14 = vpop.f32.mrf.mxu0 }
  0xe8   :  { %v172_v20 = vadd.f32 1.0, %v377_v14 }
  0xe9   :  { %v153_v15 = vpop.f32.mrf.mxu0 }
  0xea   :  { %v171_v16 = vadd.f32 1.0, %v153_v15 }
  0xec   :  { %175 = vperm.xlu0 %389, %v171_v16  }
  0xf0   :  { %180 = vperm.xlu0 %389, %v172_v20  }
 0x167   :  { %v176_v22 = vpop.permute.xlu0 %175 }
 0x168   :  { %390 = vrcp.f32 %v176_v22 }
 0x16b   :  { %v181_v23 = vpop.permute.xlu0 %180 }
 0x16c   :  { %392 = vrcp.f32 %v181_v23 }
 0x175   :  { %v391_v25 = vpop.eup %390 }
 0x176   :  { %v184_v26 = vmul.f32 %v391_v25, %v153_v15 }
 0x178   :  { %v198_v27 = vsel %vm197_vm4, %v184_v26, %v192_v24 }
 0x179   :  { %v393_v28 = vpop.eup %392  ;;  %v201_v29 = vsel %vm200_vm5, %v198_v27, 0.0  ;;  %359 = vmatmul.mubr.msk.f32.vlgmr.msra.gmra.mxu1 %vm200_vm5, %v198_v27 }
 0x17a   :  { %203 = vst [vmem:[#allocation8] sm:$0xff] %v201_v29  ;;  %v186_v31 = vmul.f32 %v393_v28, %v377_v14  ;;  %292 = vmatprep.mubr.f32.mxu1 %v508_v1 }
 0x17c   :  { %v199_v32 = vsel %vm197_vm4, %v186_v31, %v194_v30 }
 0x17d   :  { %v202_v33 = vsel %vm200_vm5, %v199_v32, 0.0  ;;  %360 = vmatmul.mubr.msk.f32.gmra.mxu1 %vm200_vm5, %v199_v32 }
 0x17e   :  { %204 = vst [vmem:[#allocation8 + $0x8] sm:$0xff] %v202_v33 }
 0x17f   :  { %445 = shalt.err (!%p442_p0)
}
 0x180   :  { %314 = dma.vmem_to_hbm [thread:$0]  %s309_s14, 256, %s590_s4, [#allocation5], %s503_s24, %s503_s24, %s504_s25  }
 0x181   :  { %s511_s18 = smov [#allocation9]   ;;  %s512_s20 = smov [#allocation11]  }
 0x182   :  { %s320_s19 = sshll.u32 %s511_s18, 4  ;;  %s332_s21 = sshll.u32 %s512_s20, 4  ;;  %s321_s19 = int_to_ptr.vmem [resolvable:$true] %s320_s19  ;;  %s333_s21 = int_to_ptr.vmem [resolvable:$true] %s332_s21 }
 0x183   :  { %s454_s22 = scalar_lea.vmem %s321_s19, 256  ;;  %p459_p2 = scmp.lt.s32.totalorder %s321_s19, %s321_s19 }
 0x184   :  { %p455_p1 = scmp.ne.s32.totalorder %s321_s19, %s454_s22  ;;  %p460_p3 = scmp.lt.s32.totalorder %s454_s22, %s454_s22 }
 0x186   :  { %p461_p4 = por %p460_p3, %p459_p2 }
 0x188   :  { %p462_p5 = pnand %p461_p4, %p455_p1 }
 0x239   :  { %v288_v34 = vpop.f32.mrf.mxu1 }
 0x23a   :  { %299 = vst [vmem:[#allocation9] sm:$0xff] %v288_v34 }
 0x23b   :  { %v290_v35 = vpop.f32.mrf.mxu1 }
 0x23c   :  { %301 = vst [vmem:[#allocation11] sm:$0xff] %v290_v35 }
 0x23d   :  { %v294_v36 = vpop.f32.mrf.mxu1 }
 0x23e   :  { %300 = vst [vmem:[#allocation9 + $0x8] sm:$0xff] %v294_v36 }
 0x23f   :  { %v296_v37 = vpop.f32.mrf.mxu1 }
 0x240   :  { %465 = shalt.err (!%p462_p5)
}
 0x241   :  { %326 = dma.vmem_to_hbm [thread:$0]  %s321_s19, 256, %s591_s5, [#allocation10], %s503_s24, %s503_s24, %s504_s25   ;;  %302 = vst [vmem:[#allocation11 + $0x8] sm:$0xff] %v296_v37 }
 0x242   :  { %s474_s26 = scalar_lea.vmem %s333_s21, 256  ;;  %p479_p7 = scmp.lt.s32.totalorder %s333_s21, %s333_s21 }
 0x243   :  { %p475_p6 = scmp.ne.s32.totalorder %s333_s21, %s474_s26  ;;  %p480_p8 = scmp.lt.s32.totalorder %s474_s26, %s474_s26 }
 0x245   :  { %p481_p9 = por %p480_p8, %p479_p7 }
 0x247   :  { %p482_p10 = pnand %p481_p9, %p475_p6 }
 0x249   :  { %485 = shalt.err (!%p482_p10)
}
 0x24a   :  { %338 = dma.vmem_to_hbm [thread:$0]  %s333_s21, 256, %s592_s6, [#allocation10], %s503_s24, %s503_s24, %s504_s25  }
 0x24b   :  { %498 = dma.done.wait [#allocation5], 256  }
 0x24c   :  { %499 = vsyncadd [#allocation5], 4294967040 }
 0x24d   :  { %500 = dma.done.wait [#allocation10], 512  }
 0x24e   :  { %501 = vsyncadd [#allocation10], 4294966784 }
 0x24f   :  { %348 = vsyncpa [#allocation4], 1 }
 0x250   :  { %349 = vsyncpa [#allocation7], 1 }
 0x251   :  { %350 = vsyncpa [#allocation5], 1 }
 0x252   :  { %351 = vsyncpa [#allocation10], 1 }

</bundles_post_ra>
